<compile_context>
chip_gen: v6e
topology: v6e:2x2x1
jax: 0.10.0
libtpu: 0.0.40
codegen_flags: <defaults>
</compile_context>

<pallas_src>
import functools

import jax
import jax.numpy as jnp
from jax.experimental import pallas as pl
from jax.experimental.pallas import tpu as pltpu


def _rope_kernel(pos_ref, inv_ref, cos_ref, sin_ref):
    # pos_ref: (tile_rows, 1) int32 ; inv_ref: (1, dim) f32 (pre-duplicated)
    # cos_ref / sin_ref: (tile_rows, dim) out_dtype
    pos = pos_ref[...].astype(jnp.float32)       # (tile_rows, 1)
    inv = inv_ref[...]                           # (1, dim)
    freqs = pos * inv                            # (tile_rows, dim) VPU broadcast, lane-dense
    cos_ref[...] = jnp.cos(freqs).astype(cos_ref.dtype)   # dense, unmasked stores
    sin_ref[...] = jnp.sin(freqs).astype(sin_ref.dtype)


@functools.partial(jax.jit, static_argnames=("tile_rows", "out_dtype"))
def llama_rotary_embedding(position_ids, inv_freq, *, tile_rows=4096,
                           out_dtype=jnp.float32):
    """position_ids: (B, S) int ; inv_freq: (dim//2,) f32 -> cos, sin of (B, 1, S, dim)."""
    B, S = position_ids.shape
    half = inv_freq.shape[-1]
    dim = 2 * half
    rows = B * S

    # Largest tile <= tile_rows that still covers small inputs; keep a multiple
    # of 8 sublanes.  4096 x 128 f32 = 2 MiB/block/output -> ~8 MiB total with
    # double-buffering of both outputs, inside the default scoped-VMEM budget
    # on v5e (16 MiB), v6e and v7x (32 MiB).  Raise tile_rows (and
    # vmem_limit_bytes) for v7x if profiling shows step overhead still matters.
    tr = max(8, min(tile_rows, ((rows + 7) // 8) * 8))
    grid = (pl.cdiv(rows, tr),)

    # Layout prep done once in XLA (tiny arrays), not per grid step in-kernel.
    pos_rows = position_ids.reshape(rows, 1).astype(jnp.int32)
    inv_2d = inv_freq.reshape(1, half).astype(jnp.float32)
    inv_full = jnp.concatenate([inv_2d, inv_2d], axis=-1)      # (1, dim)

    # TODO(synk): if dim < 128 head variants become store-bound, pack
    # 128//dim positions per output row so the out block last dim is 128
    # (lane-dense vst instead of masked vst.msk).
    cos, sin = pl.pallas_call(
        _rope_kernel,
        grid=grid,
        out_shape=(
            jax.ShapeDtypeStruct((rows, dim), out_dtype),
            jax.ShapeDtypeStruct((rows, dim), out_dtype),
        ),
        in_specs=[
            pl.BlockSpec((tr, 1), lambda i: (i, 0)),
            pl.BlockSpec((1, dim), lambda i: (0, 0)),
        ],
        out_specs=(
            pl.BlockSpec((tr, dim), lambda i: (i, 0)),
            pl.BlockSpec((tr, dim), lambda i: (i, 0)),
        ),
        compiler_params=pltpu.CompilerParams(
            dimension_semantics=("parallel",)),
    )(pos_rows, inv_full)

    # PyTorch returns cos/sin of shape (B, 1, S, dim)
    cos = cos.reshape(B, S, dim)[:, None, :, :]
    sin = sin.reshape(B, S, dim)[:, None, :, :]
    return cos, sin


def make_inv_freq(dim, base=10000.0):
    # inv_freq = 1 / base ** (arange(0, dim, 2) / dim), shape (dim//2,)
    exponents = jnp.arange(0, dim, 2, dtype=jnp.float32) / dim
    return (1.0 / (base ** exponents)).astype(jnp.float32)


def _reference(position_ids, inv_freq):
    pos = position_ids.astype(jnp.float32)
    freqs = pos[:, :, None] * inv_freq[None, None, :]
    full = jnp.concatenate([freqs, freqs], axis=-1)
    return jnp.cos(full)[:, None], jnp.sin(full)[:, None]


if __name__ == "__main__":
    B, S, DIM = 2, 8, 32
    key = jax.random.PRNGKey(0)
    position_ids = jax.random.randint(key, (B, S), minval=0, maxval=8192,
                                      dtype=jnp.int32)
    inv_freq = make_inv_freq(DIM)

    cos, sin = llama_rotary_embedding(position_ids, inv_freq)
    jax.block_until_ready((cos, sin))

    cos_ref, sin_ref = _reference(position_ids, inv_freq)
    assert cos.shape == (B, 1, S, DIM) and sin.shape == (B, 1, S, DIM)
    assert jnp.allclose(cos, cos_ref, atol=1e-5, rtol=1e-5)
    assert jnp.allclose(sin, sin_ref, atol=1e-5, rtol=1e-5)

    print("KERNEL_OK")
</pallas_src>

<mosaic_0001>
module attributes {stable_mosaic.version = 11 : i64} {
  func.func @_rope_kernel(%arg0: i32, %arg1: memref<16x1xi32, #tpu.memory_space<vmem>>, %arg2: memref<1x32xf32, #tpu.memory_space<vmem>>, %arg3: memref<16x32xf32, #tpu.memory_space<vmem>>, %arg4: memref<16x32xf32, #tpu.memory_space<vmem>>) attributes {dimension_semantics = [#tpu.dimension_semantics<parallel>], iteration_bounds = array<i64: 1>, scalar_prefetch = 0 : i64, scratch_operands = 0 : i64, tpu.core_type = #tpu.core_type<tc>, window_params = [{transform_indices = @transform_0, window_bounds = array<i64: 16, 1>}, {pipeline_mode = #tpu.pipeline_mode<synchronous>, transform_indices = @transform_1, window_bounds = array<i64: 1, 32>}, {transform_indices = @transform_2, window_bounds = array<i64: 16, 32>}, {transform_indices = @transform_3, window_bounds = array<i64: 16, 32>}]} {
    %c0 = arith.constant 0 : index
    %c0_0 = arith.constant 0 : index
    %0 = vector.load %arg1[%c0, %c0_0] : memref<16x1xi32, #tpu.memory_space<vmem>>, vector<16x1xi32>
    %1 = arith.sitofp %0 : vector<16x1xi32> to vector<16x1xf32>
    %c0_1 = arith.constant 0 : index
    %c0_2 = arith.constant 0 : index
    %2 = vector.load %arg2[%c0_1, %c0_2] : memref<1x32xf32, #tpu.memory_space<vmem>>, vector<1x32xf32>
    %3 = vector.broadcast %1 : vector<16x1xf32> to vector<16x32xf32>
    %4 = vector.broadcast %2 : vector<1x32xf32> to vector<16x32xf32>
    %5 = arith.mulf %3, %4 : vector<16x32xf32>
    %6 = math.cos %5 : vector<16x32xf32>
    %c0_3 = arith.constant 0 : index
    %c0_4 = arith.constant 0 : index
    %7 = vector.load %arg3[%c0_3, %c0_4] : memref<16x32xf32, #tpu.memory_space<vmem>>, vector<16x32xf32>
    tpu.vector_store %arg3[%c0_3, %c0_4], %6 {strides = array<i32>} : memref<16x32xf32, #tpu.memory_space<vmem>>, vector<16x32xf32>,
    %8 = math.sin %5 : vector<16x32xf32>
    %c0_5 = arith.constant 0 : index
    %c0_6 = arith.constant 0 : index
    %9 = vector.load %arg4[%c0_5, %c0_6] : memref<16x32xf32, #tpu.memory_space<vmem>>, vector<16x32xf32>
    tpu.vector_store %arg4[%c0_5, %c0_6], %8 {strides = array<i32>} : memref<16x32xf32, #tpu.memory_space<vmem>>, vector<16x32xf32>,
    return
  }
  func.func @transform_0(%arg0: i32) -> (i32, i32) {
    %c0_i32 = arith.constant 0 : i32
    %c0_i32_0 = arith.constant 0 : i32
    return %arg0, %c0_i32 : i32, i32
  }
  func.func @transform_1(%arg0: i32) -> (i32, i32) {
    %c0_i32 = arith.constant 0 : i32
    %c0_i32_0 = arith.constant 0 : i32
    %c0_i32_1 = arith.constant 0 : i32
    return %c0_i32, %c0_i32_0 : i32, i32
  }
  func.func @transform_2(%arg0: i32) -> (i32, i32) {
    %c0_i32 = arith.constant 0 : i32
    %c0_i32_0 = arith.constant 0 : i32
    return %arg0, %c0_i32 : i32, i32
  }
  func.func @transform_3(%arg0: i32) -> (i32, i32) {
    %c0_i32 = arith.constant 0 : i32
    %c0_i32_0 = arith.constant 0 : i32
    return %arg0, %c0_i32 : i32, i32
  }
}

</mosaic_0001>

<bundles_post_ra>
// kernel: llama_rotary_embedding.1
= control target key start
LH: loop header
LB: loop body
LE: loop exit
PB: predicated region body
PF: predicated region fallthrough
CT: control target
= control target key end

     0   :  { %9 = vsyncpa [#allocation3], 0  ;;  %v578_v2 = vmov 0   ;;  %s688_s0 = inlined_call_operand.vmem [shape: s32[16,1], index: 0, kind: input, shape index: {}]   ;;  %s689_s1 = inlined_call_operand.vmem [shape: f32[1,32], index: 1, kind: input, shape index: {}]   ;;  %s690_s2 = inlined_call_operand.hbm [shape: f32[16,32], index: 2, kind: output, shape index: {0}]   ;;  %s691_s3 = inlined_call_operand.hbm [shape: f32[16,32], index: 3, kind: output, shape index: {1}]  }
   0x1   :  { %v15_v0 = vld [vmem:[%s688_s0] sm:$0xff]  ;;  %v16_v1 = vld [vmem:[%s688_s0 + $0x8] sm:$0xff]  ;;  %525 = vset.pattern.permute.xlu0 %v578_v2 }
   0x2   :  { %v17_v3 = vcvt.s32.f32 %v15_v0 }
   0x3   :  { %10 = vsyncpa [#allocation5], 0  ;;  %v18_v4 = vcvt.s32.f32 %v16_v1  ;;  %v489_v5 = vld [vmem:[%s689_s1] ss:$0 sm:$0xff]  ;;  %v579_v26 = vmov 683565275  }
   0x4   :  { %22 = vperm.xlu0 %525, %v17_v3   ;;  %v580_v30 = vmov 2475754826   ;;  %v581_v32 = vmov 2131351028   ;;  %v582_v34 = vmov 2102212464  }
   0x5   :  { %v583_v36 = vmov 920167782   ;;  %v584_v43 = vmov 1326507024   ;;  %s585_s0 = smov [#allocation2]   ;;  %s586_s18 = smov [#allocation4]  }
   0x6   :  { %s462_s1 = sshll.u32 %s585_s0, 4  ;;  %s474_s19 = sshll.u32 %s586_s18, 4  ;;  %s463_s1 = int_to_ptr.vmem [resolvable:$true] %s462_s1  ;;  %s475_s19 = int_to_ptr.vmem [resolvable:$true] %s474_s19 }
   0x7   :  { %s534_s20 = scalar_lea.vmem %s463_s1, 256  ;;  %p539_p1 = scmp.lt.s32.totalorder %s463_s1, %s463_s1 }
   0x8   :  { %27 = vperm.xlu0 %525, %v18_v4   ;;  %p535_p0 = scmp.ne.s32.totalorder %s463_s1, %s534_s20  ;;  %p540_p2 = scmp.lt.s32.totalorder %s534_s20, %s534_s20 }
   0xa   :  { %p541_p3 = por %p540_p2, %p539_p1 }
   0xc   :  { %p542_p4 = pnand %p541_p3, %p535_p0 }
  0x7f   :  { %v23_v6 = vpop.permute.xlu0 %22 }
  0x80   :  { %v618_v7 = vmul.f32 %v489_v5, %v23_v6 }
  0x82   :  { %v38_v8 = vand.u32 2147483647, %v618_v7  ;;  %v41_v9 = vand.u32 2139095040, %v618_v7  ;;  %vm40_vm14 = vcmp.lt.s32.totalorder %v618_v7, 0 }
  0x83   :  { %v28_v10 = vpop.permute.xlu0 %27 }
  0x84   :  { %v42_v11 = vshrl.u32 %v41_v9, 23  ;;  %v622_v12 = vmul.f32 %v489_v5, %v28_v10  ;;  %v45_v13 = vand.u32 8388607, %v38_v8  ;;  %vm39_vm15 = vcmp.le.f32.partialorder %v38_v8, 0.7853982 }
  0x86   :  { %v490_v14 = vadd.s32 4294967169, %v42_v11  ;;  %v144_v15 = vand.u32 2139095040, %v622_v12  ;;  %v46_v17 = vor.u32 8388608, %v45_v13  ;;  %v141_v19 = vand.u32 2147483647, %v622_v12 }
  0x88   :  { %v48_v16 = vadd.s32 1, %v490_v14  ;;  %v145_v18 = vshrl.u32 %v144_v15, 23  ;;  %v628_v24 = vshll.u32 %v46_v17, 8  ;;  %v148_v28 = vand.u32 8388607, %v141_v19 }
  0x8a   :  { %vm49_vm0 = vcmp.gt.s32.totalorder %v48_v16, 0  ;;  %v494_v21 = vadd.s32 4294967169, %v145_v18  ;;  %v149_v58 = vor.u32 8388608, %v148_v28 }
  0x8b   :  { %v50_v20 = vsel %vm49_vm0, %v48_v16, 0  ;;  %vm143_vm0 = vcmp.lt.s32.totalorder %v622_v12, 0 }
  0x8c   :  { %v51_v22 = vshrl.u32 %v50_v20, 5  ;;  %v52_v23 = vand.u32 31, %v50_v20  ;;  %v151_v29 = vadd.s32 1, %v494_v21  ;;  %v189_v9 = vshll.u32 %v149_v58, 8 }
  0x8e   :  { %v53_v25 = vsub.s32 32, %v52_v23  ;;  %v55_v27 = vshll.u32 %v579_v26, %v52_v23  ;;  %v58_v31 = vshll.u32 %v580_v30, %v52_v23  ;;  %v61_v33 = vshll.u32 %v581_v32, %v52_v23 }
  0x8f   :  { %v64_v35 = vshll.u32 %v582_v34, %v52_v23  ;;  %v67_v37 = vshll.u32 %v583_v36, %v52_v23  ;;  %vm70_vm1 = vcmp.lt.s32.totalorder %v51_v22, 1  ;;  %vm72_vm2 = vcmp.lt.s32.totalorder %v51_v22, 3 }
  0x90   :  { %v56_v38 = vshrl.u32 %v580_v30, %v53_v25  ;;  %v59_v39 = vshrl.u32 %v581_v32, %v53_v25  ;;  %v62_v40 = vshrl.u32 %v582_v34, %v53_v25  ;;  %v54_v41 = vshrl.u32 %v579_v26, %v53_v25 }
  0x91   :  { %v65_v42 = vshrl.u32 %v583_v36, %v53_v25  ;;  %v68_v44 = vshrl.u32 %v584_v43, %v53_v25  ;;  %vm152_vm3 = vcmp.gt.s32.totalorder %v151_v29, 0  ;;  %vm73_vm4 = vcmp.lt.s32.totalorder %v51_v22, 4 }
  0x92   :  { %v57_v45 = vor.u32 %v56_v38, %v55_v27  ;;  %v60_v46 = vor.u32 %v59_v39, %v58_v31  ;;  %v63_v47 = vor.u32 %v62_v40, %v61_v33  ;;  %v153_v50 = vsel %vm152_vm3, %v151_v29, 0 }
  0x93   :  { %v66_v48 = vor.u32 %v65_v42, %v64_v35  ;;  %v69_v49 = vor.u32 %v68_v44, %v67_v37  ;;  %vm71_vm5 = vcmp.lt.s32.totalorder %v51_v22, 2  ;;  %v155_v61 = vand.u32 31, %v153_v50 }
  0x94   :  { %v74_v51 = vsel %vm70_vm1, %v54_v41, %v57_v45  ;;  %v75_v52 = vsel %vm73_vm4, %v63_v47, 2102212464  ;;  %v78_v53 = vsel %vm70_vm1, %v57_v45, %v60_v46  ;;  %v82_v54 = vsel %vm70_vm1, %v60_v46, %v63_v47 }
  0x95   :  { %v76_v55 = vsel %vm72_vm2, %v60_v46, %v75_v52  ;;  %v79_v56 = vsel %vm73_vm4, %v66_v48, 920167782  ;;  %v83_v57 = vsel %vm73_vm4, %v69_v49, 1326507024  ;;  %v154_v5 = vshrl.u32 %v153_v50, 5 }
  0x96   :  { %v80_v59 = vsel %vm72_vm2, %v63_v47, %v79_v56  ;;  %v84_v60 = vsel %vm72_vm2, %v66_v48, %v83_v57  ;;  %v77_v62 = vsel %vm71_vm5, %v74_v51, %v76_v55  ;;  %v156_v6 = vsub.s32 32, %v155_v61 }
  0x97   :  { %v81_v63 = vsel %vm71_vm5, %v78_v53, %v80_v59  ;;  %v85_v0 = vsel %vm71_vm5, %v82_v54, %v84_v60  ;;  %v93_v10 = vmul.u32 %v628_v24, %v77_v62  ;;  %v158_v11 = vshll.u32 %v579_v26, %v155_v61 }
  0x98   :  { %v641_v1 = vmul.u32.u64.low %v628_v24, %v85_v0  ;;  %v642_v2 = vmul.u32.u64.high %v628_v24, %v85_v0, %v641_v1  ;;  %v645_v3 = vmul.u32.u64.low %v628_v24, %v81_v63  ;;  %v646_v4 = vmul.u32.u64.high %v628_v24, %v81_v63, %v645_v3 }
  0x99   :  { %v161_v13 = vshll.u32 %v580_v30, %v155_v61  ;;  %v164_v14 = vshll.u32 %v581_v32, %v155_v61  ;;  %v159_v15 = vshrl.u32 %v580_v30, %v156_v6  ;;  %v162_v16 = vshrl.u32 %v581_v32, %v156_v6 }
  0x9a   :  { %v165_v17 = vshrl.u32 %v582_v34, %v156_v6  ;;  %v167_v18 = vshll.u32 %v582_v34, %v155_v61  ;;  %vm95_vm6 = vc.u32 %v642_v2, %v645_v3  ;;  %v96_v20 = vadd.s32 1, %v646_v4 }
  0x9b   :  { %v168_v21 = vshrl.u32 %v583_v36, %v156_v6  ;;  %v170_v22 = vshll.u32 %v583_v36, %v155_v61  ;;  %v160_v23 = vor.u32 %v159_v15, %v158_v11  ;;  %v163_v25 = vor.u32 %v162_v16, %v161_v13 }
  0x9c   :  { %v166_v27 = vor.u32 %v165_v17, %v164_v14  ;;  %v171_v28 = vshrl.u32 %v584_v43, %v156_v6  ;;  %v97_v24 = vsel %vm95_vm6, %v96_v20, %v646_v4  ;;  %vm173_vm7 = vcmp.lt.s32.totalorder %v154_v5, 1 }
  0x9d   :  { %v169_v29 = vor.u32 %v168_v21, %v167_v18  ;;  %vm176_vm8 = vcmp.lt.s32.totalorder %v154_v5, 4  ;;  %v98_v30 = vadd.s32 %v97_v24, %v93_v10  ;;  %vm175_vm9 = vcmp.lt.s32.totalorder %v154_v5, 3 }
  0x9e   :  { %v172_v31 = vor.u32 %v171_v28, %v170_v22  ;;  %v178_v32 = vsel %vm176_vm8, %v166_v27, 2102212464  ;;  %v157_v33 = vshrl.u32 %v579_v26, %v156_v6  ;;  %v181_v34 = vsel %vm173_vm7, %v160_v23, %v163_v25 }
  0x9f   :  { %v182_v35 = vsel %vm176_vm8, %v169_v29, 920167782  ;;  %v185_v37 = vsel %vm173_vm7, %v163_v25, %v166_v27  ;;  %v99_v38 = vadd.s32 536870912, %v98_v30  ;;  %vm174_vm10 = vcmp.lt.s32.totalorder %v154_v5, 2 }
  0xa0   :  { %v183_v36 = vsel %vm175_vm9, %v166_v27, %v182_v35  ;;  %v186_v39 = vsel %vm176_vm8, %v172_v31, 1326507024  ;;  %v177_v40 = vsel %vm173_vm7, %v157_v33, %v160_v23  ;;  %v179_v41 = vsel %vm175_vm9, %v163_v25, %v178_v32 }
  0xa1   :  { %v184_v42 = vsel %vm174_vm10, %v181_v34, %v183_v36  ;;  %v187_v43 = vsel %vm175_vm9, %v169_v29, %v186_v39  ;;  %v100_v44 = vshrl.u32 %v99_v38, 30  ;;  %v180_v50 = vsel %vm174_vm10, %v177_v40, %v179_v41 }
  0xa2   :  { %v188_v45 = vsel %vm174_vm10, %v185_v37, %v187_v43  ;;  %v656_v46 = vmul.u32.u64.low %v189_v9, %v184_v42  ;;  %v657_v47 = vmul.u32.u64.high %v189_v9, %v184_v42, %v656_v46  ;;  %v196_v53 = vmul.u32 %v189_v9, %v180_v50 }
  0xa3   :  { %v659_v48 = vmul.u32.u64.low %v189_v9, %v188_v45  ;;  %v660_v49 = vmul.u32.u64.high %v189_v9, %v188_v45, %v659_v48  ;;  %v101_v26 = vshll.u32 %v100_v44, 30  ;;  %v94_v1 = vadd.s32 %v645_v3, %v642_v2 }
  0xa4   :  { %v199_v52 = vadd.s32 1, %v657_v47  ;;  %v124_v28 = vsub.s32 4, %v100_v44  ;;  %vm142_vm1 = vcmp.le.f32.partialorder %v141_v19, 0.7853982  ;;  %vm244_vm2 = vcmask 261120  }
  0xa5   :  { %v102_v51 = vsub.s32 %v98_v30, %v101_v26  ;;  %vm198_vm11 = vc.u32 %v660_v49, %v656_v46  ;;  %v197_v25 = vadd.s32 %v656_v46, %v660_v49  ;;  %vm130_vm9 = vweird.f32 %v618_v7 }
  0xa6   :  { %v200_v55 = vsel %vm198_vm11, %v199_v52, %v657_v47  ;;  %v125_v35 = vsel %vm40_vm14, %v124_v28, %v100_v44 }
  0xa7   :  { %v104_v54 = vsub.s32 0, %v102_v51  ;;  %v201_v56 = vadd.s32 %v200_v55, %v196_v53  ;;  %v127_v39 = vsel %vm39_vm15, 0, %v125_v35 }
  0xa8   :  { %v340_v42 = vadd.s32 3, %v127_v39  ;;  %v131_v46 = vand.u32 3, %v127_v39 }
  0xa9   :  { %v491_v57 = vmin.u32 %v104_v54, %v102_v51  ;;  %v202_v58 = vadd.s32 536870912, %v201_v56 }
  0xaa   :  { %v341_v44 = vand.u32 3, %v340_v42  ;;  %vm136_vm3 = vcmp.eq.s32.totalorder %v131_v46, 2  ;;  %vm133_vm5 = vcmp.eq.s32.totalorder %v131_v46, 0  ;;  %vm132_vm7 = vcmp.lt.s32.totalorder %v131_v46, 2 }
  0xab   :  { %v106_v59 = vclz %v491_v57  ;;  %v203_v60 = vshrl.u32 %v202_v58, 30 }
  0xac   :  { %vm346_vm4 = vcmp.eq.s32.totalorder %v341_v44, 2  ;;  %vm343_vm6 = vcmp.eq.s32.totalorder %v341_v44, 0  ;;  %vm342_vm8 = vcmp.lt.s32.totalorder %v341_v44, 2 }
  0xad   :  { %v492_v61 = vadd.s32 4294967294, %v106_v59  ;;  %v204_v62 = vshll.u32 %v203_v60, 30  ;;  %v227_v43 = vsub.s32 4, %v203_v60 }
  0xaf   :  { %vm493_vm12 = vcmp.lt.s32.totalorder %v492_v61, 0  ;;  %v205_v0 = vsub.s32 %v201_v56, %v204_v62  ;;  %v228_v47 = vsel %vm143_vm0, %v227_v43, %v203_v60 }
  0xb0   :  { %v109_v63 = vsel %vm493_vm12, 0, %v492_v61 }
  0xb1   :  { %v110_v4 = vsub.s32 32, %v109_v63  ;;  %v114_v5 = vsub.s32 4294967266, %v109_v63  ;;  %v207_v6 = vsub.s32 0, %v205_v0  ;;  %v111_v9 = vshll.u32 %v102_v51, %v109_v63 }
  0xb2   :  { %v230_v51 = vsel %vm142_vm1, 0, %v228_v47 }
  0xb3   :  { %v112_v10 = vshrl.u32 %v94_v1, %v110_v4  ;;  %v115_v11 = vadd.s32 127, %v114_v5  ;;  %v495_v13 = vmin.u32 %v207_v6, %v205_v0  ;;  %v444_v57 = vadd.s32 3, %v230_v51 }
  0xb4   :  { %v234_v60 = vand.u32 3, %v230_v51 }
  0xb5   :  { %v113_v14 = vor.u32 %v112_v10, %v111_v9  ;;  %v116_v15 = vshll.u32 %v115_v11, 23  ;;  %v209_v16 = vclz %v495_v13  ;;  %v445_v61 = vand.u32 3, %v444_v57 }
  0xb6   :  { %vm239_vm10 = vcmp.eq.s32.totalorder %v234_v60, 2  ;;  %vm236_vm12 = vcmp.eq.s32.totalorder %v234_v60, 0 }
  0xb7   :  { %v117_v17 = vor.u32 4788187, %v116_v15  ;;  %v496_v18 = vadd.s32 4294967294, %v209_v16  ;;  %v120_v21 = vcvt.s32.f32 %v113_v14  ;;  %vm450_vm11 = vcmp.eq.s32.totalorder %v445_v61, 2 }
  0xb9   :  { %v118_v20 = vand.u32 2147483647, %v117_v17  ;;  %vm497_vm13 = vcmp.lt.s32.totalorder %v496_v18, 0 }
  0xba   :  { %v212_v23 = vsel %vm497_vm13, 0, %v496_v18  ;;  %vm447_vm13 = vcmp.eq.s32.totalorder %v445_v61, 0 }
  0xbb   :  { %v121_v22 = vmul.f32 %v120_v21, %v118_v20  ;;  %v213_v2 = vsub.s32 32, %v212_v23  ;;  %v217_v3 = vsub.s32 4294967266, %v212_v23  ;;  %v214_v24 = vshll.u32 %v205_v0, %v212_v23 }
  0xbd   :  { %v122_v27 = vxor.u32 2147483648, %v121_v22  ;;  %v215_v29 = vshrl.u32 %v197_v25, %v213_v2  ;;  %v218_v30 = vadd.s32 127, %v217_v3 }
  0xbf   :  { %v123_v31 = vsel %vm40_vm14, %v122_v27, %v121_v22  ;;  %v216_v33 = vor.u32 %v215_v29, %v214_v24  ;;  %v219_v34 = vshll.u32 %v218_v30, 23  ;;  %vm235_vm14 = vcmp.lt.s32.totalorder %v234_v60, 2 }
  0xc0   :  { %v126_v32 = vsel %vm39_vm15, %v618_v7, %v123_v31  ;;  %vm446_vm15 = vcmp.lt.s32.totalorder %v445_v61, 2 }
  0xc1   :  { %526 = vcosq.f32 %v126_v32  ;;  %v220_v37 = vor.u32 4788187, %v219_v34  ;;  %v223_v36 = vcvt.s32.f32 %v216_v33 }
  0xc2   :  { %528 = vsinq.f32 %v126_v32 }
  0xc3   :  { %v221_v38 = vand.u32 2147483647, %v220_v37 }
  0xc5   :  { %v224_v40 = vmul.f32 %v223_v36, %v221_v38 }
  0xc7   :  { %v225_v41 = vxor.u32 2147483648, %v224_v40 }
  0xc9   :  { %v226_v8 = vsel %vm143_vm0, %v225_v41, %v224_v40  ;;  %vm233_vm0 = vweird.f32 %v622_v12 }
  0xca   :  { %v229_v45 = vsel %vm142_vm1, %v622_v12, %v226_v8 }
  0xcb   :  { %530 = vcosq.f32 %v229_v45 }
  0xcc   :  { %532 = vsinq.f32 %v229_v45 }
  0xce   :  { %v527_v48 = vpop.eup %526 }
  0xcf   :  { %v529_v49 = vpop.eup %528  ;;  %v137_v26 = vxor.u32 2147483648, %v527_v48 }
  0xd0   :  { %v134_v50 = vxor.u32 2147483648, %v529_v49 }
  0xd1   :  { %v138_v52 = vsel %vm136_vm3, %v137_v26, %v529_v49  ;;  %v348_v19 = vsel %vm346_vm4, %v137_v26, %v529_v49 }
  0xd2   :  { %v135_v53 = vsel %vm133_vm5, %v527_v48, %v134_v50  ;;  %v345_v54 = vsel %vm343_vm6, %v527_v48, %v134_v50 }
  0xd3   :  { %v139_v55 = vsel %vm132_vm7, %v135_v53, %v138_v52  ;;  %v349_v56 = vsel %vm342_vm8, %v345_v54, %v348_v19 }
  0xd4   :  { %v140_v58 = vsel %vm130_vm9, nan, %v139_v55  ;;  %v350_v59 = vsel %vm130_vm9, nan, %v349_v56 }
  0xd5   :  { %245 = vst.msk [vmem:[#allocation2] sm:$0xff] %vm244_vm2, %v140_v58  ;;  %455 = vst.msk [vmem:[#allocation4] sm:$0xff] %vm244_vm2, %v350_v59 }
  0xd8   :  { %v531_v62 = vpop.eup %530 }
  0xd9   :  { %v533_v63 = vpop.eup %532  ;;  %v240_v0 = vxor.u32 2147483648, %v531_v62 }
  0xda   :  { %v237_v1 = vxor.u32 2147483648, %v533_v63 }
  0xdb   :  { %v241_v7 = vsel %vm239_vm10, %v240_v0, %v533_v63  ;;  %v452_v4 = vsel %vm450_vm11, %v240_v0, %v533_v63 }
  0xdc   :  { %v238_v5 = vsel %vm236_vm12, %v531_v62, %v237_v1  ;;  %v449_v6 = vsel %vm447_vm13, %v531_v62, %v237_v1 }
  0xdd   :  { %v242_v9 = vsel %vm235_vm14, %v238_v5, %v241_v7  ;;  %v453_v10 = vsel %vm446_vm15, %v449_v6, %v452_v4 }
  0xde   :  { %v243_v11 = vsel %vm233_vm0, nan, %v242_v9  ;;  %v454_v13 = vsel %vm233_vm0, nan, %v453_v10 }
  0xdf   :  { %246 = vst.msk [vmem:[#allocation2 + $0x8] sm:$0xff] %vm244_vm2, %v243_v11  ;;  %456 = vst.msk [vmem:[#allocation4 + $0x8] sm:$0xff] %vm244_vm2, %v454_v13 }
  0xe0   :  { %545 = shalt.err (!%p542_p4)
}
  0xe1   :  { %s587_s21 = smov 128   ;;  %s588_s22 = smov 8  }
  0xe2   :  { %468 = dma.vmem_to_hbm [thread:$0]  %s463_s1, 256, %s690_s2, [#allocation3], %s587_s21, %s587_s21, %s588_s22  }
  0xe3   :  { %s554_s25 = scalar_lea.vmem %s475_s19, 256  ;;  %p559_p6 = scmp.lt.s32.totalorder %s475_s19, %s475_s19 }
  0xe4   :  { %p555_p5 = scmp.ne.s32.totalorder %s475_s19, %s554_s25  ;;  %p560_p7 = scmp.lt.s32.totalorder %s554_s25, %s554_s25 }
  0xe6   :  { %p561_p8 = por %p560_p7, %p559_p6 }
  0xe8   :  { %p562_p9 = pnand %p561_p8, %p555_p5 }
  0xea   :  { %565 = shalt.err (!%p562_p9)
}
  0xeb   :  { %480 = dma.vmem_to_hbm [thread:$0]  %s475_s19, 256, %s691_s3, [#allocation5], %s587_s21, %s587_s21, %s588_s22  }
  0xec   :  { %574 = dma.done.wait [#allocation3], 256  }
  0xed   :  { %575 = vsyncadd [#allocation3], 4294967040 }
  0xee   :  { %576 = dma.done.wait [#allocation5], 256  }
  0xef   :  { %577 = vsyncadd [#allocation5], 4294967040 }
  0xf0   :  { %487 = vsyncpa [#allocation3], 1 }
  0xf1   :  { %488 = vsyncpa [#allocation5], 1 }

</bundles_post_ra>
